<compile_context>
chip_gen: v7x
topology: tpu7x:2x2x1
jax: 0.10.0
libtpu: 0.0.40
codegen_flags: <defaults>
</compile_context>

<pallas_src>
import functools

import jax
import jax.numpy as jnp
from jax import lax
from jax.experimental import pallas as pl
from jax.experimental.pallas import tpu as pltpu


def simple_sort_net_kernel(pool_ref, qk_ref, w_ref, o_ref, *, topk_temperature):
    """One grid step == one head, all batch elements at once.

    pool_ref: [b*buckets, b*t]      0/1 bucket membership (grid-invariant)
    qk_ref:   [1, b*t, 2*d_head]    q|k of this head, batch-flattened
    w_ref:    [1, 2*d_head, max_buckets]
    o_ref:    [1, b*buckets, max_buckets]
    """
    pool = pool_ref[...]                        # [b*buckets, b*t]
    qk = qk_ref[0]                              # [b*t, dim]
    wh = w_ref[0]                               # [dim, max_buckets]

    # Bucket sums for every batch element of this head in one MXU matmul
    # (0/1 weights, f32 accumulation -> exact up to f32 summation order).
    bqk = jnp.dot(pool, qk,
                  precision=lax.Precision.HIGHEST,
                  preferred_element_type=jnp.float32)           # [b*buckets, dim]

    # Single throughput-shaped matmul per head (M = b*buckets, K = dim = 128).
    r = jnp.dot(bqk, wh,
                precision=lax.Precision.HIGHEST,
                preferred_element_type=jnp.float32)             # [b*buckets, mb]
    r = jnp.maximum(r, jnp.float32(0.0))                        # ReLU

    # differentiable_topk with k=1 (temperature=0.75), without materializing the
    # full softmax: argmax(softmax(z)) == argmax(z), and after the max-shift the
    # top value is exp(0)/sum(e) == 1/sum(e).
    z = r * jnp.float32(1.0 / topk_temperature)
    zmax = jnp.max(z, axis=-1, keepdims=True)
    e = jnp.exp(z - zmax)
    sum_e = jnp.sum(e, axis=-1, keepdims=True)
    top_val = pl.reciprocal(sum_e, approx=False)                # exact (1e-5 check)

    mb = z.shape[-1]
    lane = lax.broadcasted_iota(jnp.int32, z.shape, 1)
    cand = jnp.where(z >= zmax, lane, jnp.int32(mb))
    amin = jnp.min(cand, axis=-1, keepdims=True)                # first argmax index
    out = jnp.where(lane == amin, top_val, jnp.float32(0.0))

    o_ref[0] = out.astype(o_ref.dtype)                          # one dense slab store


@functools.partial(jax.jit,
                   static_argnames=("heads", "bucket_size", "topk_temperature"))
def simple_sort_net(q, k, linear, *, heads, bucket_size, topk_temperature=0.75):
    """q, k: [b*heads, t, d_head]; linear: [heads, 2*d_head, max_buckets]
    (== torch parameter self.linear[0]). Returns [b*heads, buckets, max_buckets]."""
    bh, t, d_head = q.shape
    assert bh % heads == 0, "batch*heads must be divisible by heads"
    assert t % bucket_size == 0, "sequence length must be divisible by bucket_size"
    b = bh // heads
    buckets = t // bucket_size
    dim = linear.shape[1]
    max_buckets = linear.shape[2]
    assert dim == 2 * d_head, "linear dim must equal 2 * head_dim"
    rows = b * buckets

    # q|k concatenated on the feature axis (halves dot count, 128-lane-dense
    # loads), regrouped head-major so one grid step sees a whole head's batch:
    # [b*heads, t, d] -> [heads, b*t, 2*d].  Row n of q maps to (n//heads, n%heads)
    # which matches torch's expand_batch_and_merge_head weight layout.
    qk = jnp.concatenate([q, k], axis=-1)                        # [bh, t, dim]
    qk = (qk.reshape(b, heads, t, dim)
            .transpose(1, 0, 2, 3)
            .reshape(heads, b * t, dim))

    # 0/1 bucket-membership matrix for ALL batch elements at once.  On the
    # flattened [b*t] axis, global bucket g simply owns columns
    # [g*bucket_size, (g+1)*bucket_size), so membership is j//bucket_size == g.
    pool = (jnp.arange(b * t, dtype=jnp.int32)[None, :] // bucket_size
            == jnp.arange(rows, dtype=jnp.int32)[:, None]).astype(jnp.float32)

    kernel = functools.partial(simple_sort_net_kernel,
                               topk_temperature=topk_temperature)

    flops = int(heads * (2 * rows * (b * t) * dim           # bucket-sum matmul
                         + 2 * rows * dim * max_buckets))   # weight matmul
    bytes_accessed = int(4 * (qk.size + pool.size + linear.size
                              + heads * rows * max_buckets))
    cost = pl.CostEstimate(flops=flops,
                           transcendentals=int(heads * rows * max_buckets),
                           bytes_accessed=bytes_accessed)

    out = pl.pallas_call(
        kernel,
        out_shape=jax.ShapeDtypeStruct((heads, rows, max_buckets), q.dtype),
        grid_spec=pltpu.PrefetchScalarGridSpec(
            num_scalar_prefetch=0,
            grid=(heads,),  # one step per head; >=2 steps per core on v7x megacore
            in_specs=[
                pl.BlockSpec((rows, b * t), lambda h: (0, 0)),            # pool (grid-invariant)
                pl.BlockSpec((1, b * t, dim), lambda h: (h, 0, 0)),       # qk of head h
                pl.BlockSpec((1, dim, max_buckets), lambda h: (h, 0, 0)), # W of head h
            ],
            out_specs=pl.BlockSpec((1, rows, max_buckets), lambda h: (h, 0, 0)),
        ),
        compiler_params=pltpu.CompilerParams(
            dimension_semantics=("parallel",)),
        cost_estimate=cost,
    )(pool, qk, linear)

    # [heads, b*buckets, mb] -> [b*heads, buckets, mb] (tiny XLA transpose).
    out = out.reshape(heads, b, buckets, max_buckets).transpose(1, 0, 2, 3)
    return out.reshape(bh, buckets, max_buckets)


if __name__ == "__main__":
    # Small shapes consistent with the module:
    #   batch=2, heads=4, seq t=64, head_dim=64 (=> dim=128), bucket_size=16
    #   (=> buckets=4), max_buckets=128 (lane-dense output).
    b, heads = 2, 4
    d_head = 64
    dim = 2 * d_head
    t = 64
    bucket_size = 16
    max_buckets = 128
    bh = b * heads
    buckets = t // bucket_size

    key = jax.random.PRNGKey(0)
    kq, kk, kw = jax.random.split(key, 3)
    q = jax.random.normal(kq, (bh, t, d_head), dtype=jnp.float32)
    k = jax.random.normal(kk, (bh, t, d_head), dtype=jnp.float32)
    # torch: self.linear = nn.Parameter(torch.randn(1, heads, dim, max_buckets));
    # we pass the squeezed [heads, dim, max_buckets] parameter.
    linear = jax.random.normal(kw, (heads, dim, max_buckets), dtype=jnp.float32)

    out = simple_sort_net(q, k, linear, heads=heads, bucket_size=bucket_size)
    out = jax.block_until_ready(out)

    # Pure-JAX reference of the torch forward (non_permutative=True, topk=1).
    b_q = q.reshape(bh, buckets, bucket_size, d_head).sum(axis=2)
    b_k = k.reshape(bh, buckets, bucket_size, d_head).sum(axis=2)
    x = jnp.concatenate([b_q, b_k], axis=-1)                          # [bh, buckets, dim]
    W = jnp.broadcast_to(linear[None], (b, heads, dim, max_buckets)
                         ).reshape(bh, dim, max_buckets)
    R = jnp.maximum(jnp.einsum("nbd,ndm->nbm", x, W,
                               precision=jax.lax.Precision.HIGHEST), 0.0)
    sm = jax.nn.softmax(R / 0.75, axis=-1)
    idx = jnp.argmax(sm, axis=-1, keepdims=True)
    val = jnp.take_along_axis(sm, idx, axis=-1)
    lane = jnp.arange(max_buckets)[None, None, :]
    ref = jnp.where(lane == idx, val, 0.0).astype(jnp.float32)

    assert out.shape == (bh, buckets, max_buckets)
    assert jnp.allclose(out, ref, atol=1e-5, rtol=1e-5)
    print("KERNEL_OK")
</pallas_src>

<mosaic_0001>
module attributes {stable_mosaic.version = 11 : i64} {
  func.func @simple_sort_net_kernel(%arg0: i32, %arg1: memref<8x128xf32, #tpu.memory_space<vmem>>, %arg2: memref<1x128x128xf32, #tpu.memory_space<vmem>>, %arg3: memref<1x128x128xf32, #tpu.memory_space<vmem>>, %arg4: memref<1x8x128xf32, #tpu.memory_space<vmem>>) attributes {dimension_semantics = [#tpu.dimension_semantics<parallel>], iteration_bounds = array<i64: 4>, scalar_prefetch = 0 : i64, scratch_operands = 0 : i64, tpu.core_type = #tpu.core_type<tc>, window_params = [{pipeline_mode = #tpu.pipeline_mode<synchronous>, transform_indices = @transform_0, window_bounds = array<i64: 8, 128>}, {transform_indices = @transform_1, window_bounds = array<i64: 1, 128, 128>}, {transform_indices = @transform_2, window_bounds = array<i64: 1, 128, 128>}, {transform_indices = @transform_3, window_bounds = array<i64: 1, 8, 128>}]} {
    %c0 = arith.constant 0 : index
    %c0_0 = arith.constant 0 : index
    %0 = vector.load %arg1[%c0, %c0_0] : memref<8x128xf32, #tpu.memory_space<vmem>>, vector<8x128xf32>
    %c0_1 = arith.constant 0 : index
    %c0_2 = arith.constant 0 : index
    %c0_3 = arith.constant 0 : index
    %1 = vector.load %arg2[%c0_1, %c0_2, %c0_3] : memref<1x128x128xf32, #tpu.memory_space<vmem>>, vector<1x128x128xf32>
    %2 = vector.shape_cast %1 : vector<1x128x128xf32> to vector<128x128xf32>
    %c0_4 = arith.constant 0 : index
    %c0_5 = arith.constant 0 : index
    %c0_6 = arith.constant 0 : index
    %3 = vector.load %arg3[%c0_4, %c0_5, %c0_6] : memref<1x128x128xf32, #tpu.memory_space<vmem>>, vector<1x128x128xf32>
    %4 = vector.shape_cast %3 : vector<1x128x128xf32> to vector<128x128xf32>
    %cst = arith.constant dense<0.000000e+00> : vector<8x128xf32>
    %5 = tpu.matmul %0, %2, %cst {dimension_numbers = #tpu.dot_dimension_numbers<[1], [0], [0], [1], [0, 0, 1, 1], [], []>, precision = #tpu.contract_precision<fp32>} : vector<8x128xf32>, vector<128x128xf32>, vector<8x128xf32> -> vector<8x128xf32>
    %cst_7 = arith.constant dense<0.000000e+00> : vector<8x128xf32>
    %6 = tpu.matmul %5, %4, %cst_7 {dimension_numbers = #tpu.dot_dimension_numbers<[1], [0], [0], [1], [0, 0, 1, 1], [], []>, precision = #tpu.contract_precision<fp32>} : vector<8x128xf32>, vector<128x128xf32>, vector<8x128xf32> -> vector<8x128xf32>
    %cst_8 = arith.constant 0.000000e+00 : f32
    %7 = vector.broadcast %cst_8 : f32 to vector<8x128xf32>
    %8 = arith.maximumf %6, %7 : vector<8x128xf32>
    %cst_9 = arith.constant 1.33333337 : f32
    %9 = vector.broadcast %cst_9 : f32 to vector<8x128xf32>
    %10 = arith.mulf %8, %9 : vector<8x128xf32>
    %cst_10 = arith.constant dense<0xFF800000> : vector<8xf32>
    %11 = vector.multi_reduction <maximumf>, %10, %cst_10 [1] : vector<8x128xf32> to vector<8xf32>
    %12 = vector.shape_cast %11 : vector<8xf32> to vector<8x1xf32>
    %13 = vector.broadcast %12 : vector<8x1xf32> to vector<8x128xf32>
    %14 = arith.subf %10, %13 : vector<8x128xf32>
    %15 = math.exp %14 : vector<8x128xf32>
    %cst_11 = arith.constant dense<0.000000e+00> : vector<8xf32>
    %16 = vector.multi_reduction <add>, %15, %cst_11 [1] : vector<8x128xf32> to vector<8xf32>
    %17 = vector.shape_cast %16 : vector<8xf32> to vector<8x1xf32>
    %18 = tpu.reciprocal %17 : vector<8x1xf32> -> vector<8x1xf32>
    %19 = tpu.iota {dimensions = array<i32: 1>} : vector<8x128xi32>
    %20 = vector.broadcast %12 : vector<8x1xf32> to vector<8x128xf32>
    %21 = arith.cmpf oge, %10, %20 : vector<8x128xf32>
    %c128_i32 = arith.constant 128 : i32
    %22 = vector.broadcast %c128_i32 : i32 to vector<8x128xi32>
    %23 = arith.select %21, %19, %22 : vector<8x128xi1>, vector<8x128xi32>
    %cst_12 = arith.constant dense<2147483647> : vector<8xi32>
    %24 = vector.multi_reduction <minsi>, %23, %cst_12 [1] : vector<8x128xi32> to vector<8xi32>
    %25 = vector.shape_cast %24 : vector<8xi32> to vector<8x1xi32>
    %26 = vector.broadcast %25 : vector<8x1xi32> to vector<8x128xi32>
    %27 = arith.cmpi eq, %19, %26 : vector<8x128xi32>
    %cst_13 = arith.constant 0.000000e+00 : f32
    %28 = vector.shape_cast %18 : vector<8x1xf32> to vector<8x1xf32>
    %29 = vector.broadcast %28 : vector<8x1xf32> to vector<8x128xf32>
    %30 = vector.broadcast %cst_13 : f32 to vector<8x128xf32>
    %31 = arith.select %27, %29, %30 : vector<8x128xi1>, vector<8x128xf32>
    %c0_14 = arith.constant 0 : index
    %c0_15 = arith.constant 0 : index
    %c0_16 = arith.constant 0 : index
    %32 = vector.load %arg4[%c0_14, %c0_15, %c0_16] : memref<1x8x128xf32, #tpu.memory_space<vmem>>, vector<1x8x128xf32>
    %33 = vector.shape_cast %32 : vector<1x8x128xf32> to vector<8x128xf32>
    %34 = vector.shape_cast %31 : vector<8x128xf32> to vector<1x8x128xf32>
    tpu.vector_store %arg4[%c0_14, %c0_15, %c0_16], %34 {strides = array<i32>} : memref<1x8x128xf32, #tpu.memory_space<vmem>>, vector<1x8x128xf32>,
    return
  }
  func.func @transform_0(%arg0: i32) -> (i32, i32) {
    %c0_i32 = arith.constant 0 : i32
    %c0_i32_0 = arith.constant 0 : i32
    %c0_i32_1 = arith.constant 0 : i32
    return %c0_i32, %c0_i32_0 : i32, i32
  }
  func.func @transform_1(%arg0: i32) -> (i32, i32, i32) {
    %c0_i32 = arith.constant 0 : i32
    %c0_i32_0 = arith.constant 0 : i32
    %c0_i32_1 = arith.constant 0 : i32
    return %arg0, %c0_i32, %c0_i32_0 : i32, i32, i32
  }
  func.func @transform_2(%arg0: i32) -> (i32, i32, i32) {
    %c0_i32 = arith.constant 0 : i32
    %c0_i32_0 = arith.constant 0 : i32
    %c0_i32_1 = arith.constant 0 : i32
    return %arg0, %c0_i32, %c0_i32_0 : i32, i32, i32
  }
  func.func @transform_3(%arg0: i32) -> (i32, i32, i32) {
    %c0_i32 = arith.constant 0 : i32
    %c0_i32_0 = arith.constant 0 : i32
    %c0_i32_1 = arith.constant 0 : i32
    return %arg0, %c0_i32, %c0_i32_0 : i32, i32, i32
  }
}

</mosaic_0001>

<bundles_post_ra>
// kernel: simple_sort_net.1
= control target key start
LH: loop header
LB: loop body
LE: loop exit
PB: predicated region body
PF: predicated region fallthrough
CT: control target
= control target key end

     0   :  { %s2592_s12 = smov 0   ;;  %s3134_s0 = inlined_call_operand.vmem [shape: f32[8,128], index: 0, kind: input, shape index: {}]   ;;  %s3135_s1 = inlined_call_operand.vmem [shape: f32[4,128,128], index: 1, kind: input, shape index: {}]   ;;  %s3136_s2 = inlined_call_operand.vmem [shape: f32[4,128,128], index: 2, kind: input, shape index: {}]   ;;  %s3137_s3 = inlined_call_operand.vmem [shape: f32[4,8,128], index: 3, kind: output, shape index: {}]  }
   0x1 LB: > { %s1600_s13 = sadd.s32 4294967295, %s2567_s12   ;;  %p1604_p0 = scmp.ge.s32.totalorder %s2567_s12, 1  ;;  %s2567_s12 = sphi %s2592_s12, %s13_s12  }
   0x2   : > { %p147_p1 = scmp.lt.s32.totalorder %s2567_s12, 5 }
   0x4   : > { %p148_p2 = pnand %p1604_p0, %p147_p1 }
   0x5   : > { %p175_p3 = scmp.lt.s32.totalorder (!%p148_p2), %s1600_s13, 3  ;;  %v2569_v0 = vmov (!%p148_p2), 0.0|0.0   ;;  %vm2570_vm0 = vmmov (!%p148_p2), 0   ;;  %v2571_v1 = vmov (!%p148_p2), 0.0   ;;  %v189_v9 = vld [vmem:[%s3134_s0] sm:$0xff] (!%p148_p2) }
   0x6   : > { %151 = sbr.rel (%p148_p2) target bundleno = 1251 (0x4e3), region = 32  ;;  %2238 = vmatprep.subr.bf16.mxu0 (!%p148_p2), %v2569_v0  ;;  %1850 = vmatprep.mubr.msk.f32.mxu0 (!%p148_p2), %vm2570_vm0, %v2571_v1  ;;  %v2627_v14 = vand.u32 (!%p148_p2), 4294901760, %v189_v9 }
   0x7   : > { %2382 = vmatprep.subr.bf16.mxu1 (!%p148_p2), %v2569_v0  ;;  %2060 = vmatprep.mubr.msk.f32.mxu1 (!%p148_p2), %vm2570_vm0, %v2571_v1 }
   0x8   : > { %v2636_v20 = vsub.f32 (!%p148_p2), %v189_v9, %v2627_v14 }
   0xa   : > { %v305_v26 = vand.u32 (!%p148_p2), 4294901760, %v2636_v20 }
   0xc   : > { %v2664_v39 = vsub.f32 (!%p148_p2), %v2636_v20, %v305_v26 }
   0xd   : > { %s3141_s13 = smov (!%p175_p3, %s1600_s13), 3 }
   0xe   : > { %s1612_s14 = sshll.u32 %s3141_s13, 7  ;;  %s1609_s23 = sshll.u32 %s3141_s13, 3 }
   0xf   : > { %s2614_s17 = scalar_lea.vmem %s3135_s1, %s1612_s14  ;;  %s2777_s22 = scalar_lea.vmem %s3136_s2, %s1612_s14 }
  0x10   : > { %v190_v2 = vld [vmem:[%s2614_s17] sm:$0xff]  ;;  %v191_v3 = vld [vmem:[%s2614_s17 + $0x8] sm:$0xff]  ;;  %v192_v4 = vld [vmem:[%s2614_s17 + $0x10] sm:$0xff]  ;;  %s188_s26 = scalar_lea.vmem %s3137_s3, %s1609_s23 }
  0x11   : > { %v223_v5 = vand.u32 4294901760, %v190_v2  ;;  %v226_v6 = vand.u32 4294901760, %v191_v3  ;;  %v193_v7 = vld [vmem:[%s2614_s17 + $0x18] sm:$0xff]  ;;  %v229_v8 = vand.u32 4294901760, %v192_v4  ;;  %v194_v11 = vld [vmem:[%s2614_s17 + $0x20] sm:$0xff]  ;;  %v195_v12 = vld [vmem:[%s2614_s17 + $0x28] sm:$0xff] }
  0x12   : > { %v232_v10 = vand.u32 4294901760, %v193_v7  ;;  %v235_v16 = vand.u32 4294901760, %v194_v11  ;;  %v238_v17 = vand.u32 4294901760, %v195_v12  ;;  %v196_v18 = vld [vmem:[%s2614_s17 + $0x30] sm:$0xff]  ;;  %v197_v19 = vld [vmem:[%s2614_s17 + $0x38] sm:$0xff]  ;;  %v198_v24 = vld [vmem:[%s2614_s17 + $0x40] sm:$0xff] }
  0x13   : > { %v2625_v13 = vpack.c.bf16 %v226_v6, %v223_v5  ;;  %v241_v22 = vand.u32 4294901760, %v196_v18  ;;  %v244_v23 = vand.u32 4294901760, %v197_v19  ;;  %v199_v25 = vld [vmem:[%s2614_s17 + $0x48] sm:$0xff]  ;;  %v2645_v27 = vsub.f32 %v190_v2, %v223_v5  ;;  %v200_v31 = vld [vmem:[%s2614_s17 + $0x50] sm:$0xff]  ;;  %v201_v32 = vld [vmem:[%s2614_s17 + $0x58] sm:$0xff] }
  0x14   : > { %v2630_v15 = vpack.c.bf16 %v232_v10, %v229_v8  ;;  %v2639_v21 = vpack.c.bf16 %v238_v17, %v235_v16  ;;  %v247_v29 = vand.u32 4294901760, %v198_v24  ;;  %v250_v30 = vand.u32 4294901760, %v199_v25  ;;  %v202_v34 = vld [vmem:[%s2614_s17 + $0x60] sm:$0xff]  ;;  %v203_v35 = vld [vmem:[%s2614_s17 + $0x68] sm:$0xff]  ;;  %v204_v37 = vld [vmem:[%s2614_s17 + $0x70] sm:$0xff] }
  0x15   : > { %2240 = vmatpush3.bf16.msra.mxu0 %v2625_v13  ;;  %v2648_v28 = vpack.c.bf16 %v244_v23, %v241_v22  ;;  %v2653_v33 = vsub.f32 %v191_v3, %v226_v6  ;;  %v2657_v36 = vsub.f32 %v192_v4, %v229_v8  ;;  %v205_v38 = vld [vmem:[%s2614_s17 + $0x78] sm:$0xff]  ;;  %v253_v41 = vand.u32 4294901760, %v200_v31 }
  0x16   : > { %2241 = vmatprep.subr.bf16.mxu0 %v2569_v0  ;;  %v2667_v40 = vpack.c.bf16 %v250_v30, %v247_v29  ;;  %v256_v42 = vand.u32 4294901760, %v201_v32  ;;  %v316_v43 = vand.u32 4294901760, %v2645_v27  ;;  %v2670_v44 = vsub.f32 %v193_v7, %v232_v10 }
  0x17   : > { %v2672_v45 = vsub.f32 %v194_v11, %v235_v16  ;;  %v259_v46 = vand.u32 4294901760, %v202_v34  ;;  %v262_v47 = vand.u32 4294901760, %v203_v35  ;;  %v2675_v48 = vsub.f32 %v195_v12, %v238_v17 }
  0x18   : > { %v265_v49 = vand.u32 4294901760, %v204_v37  ;;  %v268_v50 = vand.u32 4294901760, %v205_v38  ;;  %v323_v51 = vand.u32 4294901760, %v2653_v33  ;;  %v2678_v52 = vsub.f32 %v196_v18, %v241_v22 }
  0x19   : > { %2243 = vmatpush3.bf16.msra.mxu0 %v2630_v15  ;;  %v2680_v53 = vsub.f32 %v197_v19, %v244_v23  ;;  %v2682_v54 = vsub.f32 %v198_v24, %v247_v29  ;;  %v330_v55 = vand.u32 4294901760, %v2657_v36  ;;  %v2686_v56 = vsub.f32 %v199_v25, %v250_v30 }
  0x1a   : > { %2244 = vmatprep.subr.bf16.mxu0 %v2569_v0  ;;  %v2688_v57 = vpack.c.bf16 %v256_v42, %v253_v41  ;;  %v2690_v58 = vsub.f32 %v200_v31, %v253_v41  ;;  %v317_v59 = vsub.f32 %v2645_v27, %v316_v43  ;;  %v2694_v60 = vsub.f32 %v201_v32, %v256_v42 }
  0x1b   : > { %v2696_v61 = vpack.c.bf16 %v262_v47, %v259_v46  ;;  %v2698_v62 = vsub.f32 %v202_v34, %v259_v46  ;;  %v2700_v63 = vsub.f32 %v203_v35, %v262_v47  ;;  %v2702_v2 = vpack.c.bf16 %v268_v50, %v265_v49 }
  0x1c   : > { %v2704_v3 = vsub.f32 %v204_v37, %v265_v49  ;;  %v2706_v4 = vsub.f32 %v205_v38, %v268_v50  ;;  %v324_v5 = vsub.f32 %v2653_v33, %v323_v51  ;;  %v331_v6 = vsub.f32 %v2657_v36, %v330_v55 }
  0x1d   : > { %2246 = vmatpush3.bf16.msra.mxu0 %v2639_v21  ;;  %v337_v7 = vand.u32 4294901760, %v2670_v44  ;;  %v344_v8 = vand.u32 4294901760, %v2672_v45  ;;  %v351_v9 = vand.u32 4294901760, %v2675_v48  ;;  %v318_v10 = vand.u32 4294901760, %v317_v59 }
  0x1e   : > { %2247 = vmatprep.subr.bf16.mxu0 %v2569_v0  ;;  %v358_v11 = vand.u32 4294901760, %v2678_v52  ;;  %v365_v12 = vand.u32 4294901760, %v2680_v53  ;;  %v372_v16 = vand.u32 4294901760, %v2682_v54  ;;  %v379_v17 = vand.u32 4294901760, %v2686_v56 }
  0x1f   : > { %v386_v18 = vand.u32 4294901760, %v2690_v58  ;;  %v393_v19 = vand.u32 4294901760, %v2694_v60  ;;  %v400_v22 = vand.u32 4294901760, %v2698_v62  ;;  %v407_v23 = vand.u32 4294901760, %v2700_v63 }
  0x20   : > { %v414_v24 = vand.u32 4294901760, %v2704_v3  ;;  %v2724_v25 = vpack.c.bf16 %v323_v51, %v316_v43  ;;  %v2726_v29 = vpack.c.bf16 %v337_v7, %v330_v55  ;;  %v421_v30 = vand.u32 4294901760, %v2706_v4 }
  0x21   : > { %2249 = vmatpush3.bf16.msra.mxu0 %v2648_v28  ;;  %v2729_v31 = vpack.c.bf16 %v351_v9, %v344_v8  ;;  %v2731_v32 = vpack.c.bf16 %v365_v12, %v358_v11  ;;  %v2733_v34 = vpack.c.bf16 %v379_v17, %v372_v16  ;;  %v325_v35 = vand.u32 4294901760, %v324_v5 }
  0x22   : > { %2250 = vmatprep.subr.bf16.mxu0 %v2569_v0  ;;  %v338_v37 = vsub.f32 %v2670_v44, %v337_v7  ;;  %v2737_v38 = vpack.c.bf16 %v393_v19, %v386_v18  ;;  %v2739_v41 = vpack.c.bf16 %v407_v23, %v400_v22  ;;  %v2742_v42 = vpack.c.bf16 %v421_v30, %v414_v24 }
  0x23   : > { %v307_v43 = vand.u32 4294901760, %v2664_v39  ;;  %v332_v46 = vand.u32 4294901760, %v331_v6  ;;  %v2263_v47 = vpack.c.bf16 %v325_v35, %v318_v10  ;;  %v345_v50 = vsub.f32 %v2672_v45, %v344_v8 }
  0x24   : > { %v339_v49 = vand.u32 4294901760, %v338_v37  ;;  %v352_v51 = vsub.f32 %v2675_v48, %v351_v9  ;;  %v359_v55 = vsub.f32 %v2678_v52, %v358_v11  ;;  %v366_v39 = vsub.f32 %v2680_v53, %v365_v12 }
  0x25   : > { %2252 = vmatpush3.bf16.msra.mxu0 %v2667_v40  ;;  %v346_v5 = vand.u32 4294901760, %v345_v50  ;;  %v373_v10 = vsub.f32 %v2682_v54, %v372_v16  ;;  %v380_v35 = vsub.f32 %v2686_v56, %v379_v17  ;;  %v387_v11 = vsub.f32 %v2690_v58, %v386_v18 }
  0x26   : > { %2253 = vmatprep.subr.bf16.mxu0 %v2569_v0  ;;  %v2266_v59 = vpack.c.bf16 %v339_v49, %v332_v46  ;;  %v353_v7 = vand.u32 4294901760, %v352_v51  ;;  %v360_v6 = vand.u32 4294901760, %v359_v55  ;;  %v367_v9 = vand.u32 4294901760, %v366_v39 }
  0x27   : > { %v374_v12 = vand.u32 4294901760, %v373_v10  ;;  %v394_v46 = vsub.f32 %v2694_v60, %v393_v19  ;;  %v401_v16 = vsub.f32 %v2698_v62, %v400_v22  ;;  %v408_v17 = vsub.f32 %v2700_v63, %v407_v23 }
  0x28   : > { %v2269_v8 = vpack.c.bf16 %v353_v7, %v346_v5  ;;  %v2272_v37 = vpack.c.bf16 %v367_v9, %v360_v6  ;;  %v415_v18 = vsub.f32 %v2704_v3, %v414_v24  ;;  %v422_v19 = vsub.f32 %v2706_v4, %v421_v30  ;;  %v207_v24 = vld [vmem:[%s2777_s22 + $0x8] sm:$0xff]  ;;  %v208_v30 = vld [vmem:[%s2777_s22 + $0x10] sm:$0xff]  ;;  %v209_v9 = vld [vmem:[%s2777_s22 + $0x18] sm:$0xff] }
  0x29   : > { %2255 = vmatpush3.bf16.msra.mxu0 %v2688_v57  ;;  %v395_v50 = vand.u32 4294901760, %v394_v46  ;;  %v402_v55 = vand.u32 4294901760, %v401_v16  ;;  %v2287_v23 = vpack.c.bf16 %v2653_v33, %v2645_v27  ;;  %v2290_v27 = vpack.c.bf16 %v2670_v44, %v2657_v36  ;;  %v206_v33 = vld [vmem:[%s2777_s22] sm:$0xff] }
  0x2a   : > { %2256 = vmatprep.subr.bf16.mxu0 %v2569_v0  ;;  %v416_v7 = vand.u32 4294901760, %v415_v18  ;;  %v423_v39 = vand.u32 4294901760, %v422_v19  ;;  %v864_v6 = vand.u32 4294901760, %v206_v33  ;;  %v870_v10 = vand.u32 4294901760, %v208_v30  ;;  %v214_v46 = vld [vmem:[%s2777_s22 + $0x40] sm:$0xff]  ;;  %v216_v18 = vld [vmem:[%s2777_s22 + $0x50] sm:$0xff] }
  0x2c   : > { %v2284_v22 = vpack.c.bf16 %v423_v39, %v416_v7  ;;  %v2799_v16 = vsub.f32 %v208_v30, %v870_v10 }
  0x2d   : > { %2258 = vmatpush3.bf16.msra.mxu0 %v2696_v61 }
  0x2e   : > { %2259 = vmatprep.subr.bf16.mxu0 %v2569_v0 }
  0x31   : > { %2261 = vmatpush3.bf16.msra.mxu0 %v2702_v2 }
  0x32   : > { %2262 = vmatprep.subr.bf16.mxu0 %v2569_v0 }
  0x34   : > { %1851 = vmatmul.mubr.f32.vlgmr.msra.gmra.mrb[0].mxu0 %v307_v43  ;;  %v381_v43 = vand.u32 4294901760, %v380_v35  ;;  %v210_v35 = vld [vmem:[%s2777_s22 + $0x20] sm:$0xff] }
  0x35   : > { %2264 = vmatpush3.bf16.msra.mxu0 %v2263_v47  ;;  %1885 = vmatprep.mubr.msk.f32.mxu0 %vm2570_vm0, %v2571_v1  ;;  %v388_v47 = vand.u32 4294901760, %v387_v11  ;;  %v211_v11 = vld [vmem:[%s2777_s22 + $0x28] sm:$0xff]  ;;  %v876_v36 = vand.u32 4294901760, %v210_v35 }
  0x36   : > { %2265 = vmatprep.subr.bf16.mxu0 %v2569_v0  ;;  %v2275_v49 = vpack.c.bf16 %v381_v43, %v374_v12  ;;  %v879_v44 = vand.u32 4294901760, %v211_v11  ;;  %v212_v12 = vld [vmem:[%s2777_s22 + $0x30] sm:$0xff]  ;;  %v213_v43 = vld [vmem:[%s2777_s22 + $0x38] sm:$0xff] }
  0x37   : > { %v2278_v51 = vpack.c.bf16 %v395_v50, %v388_v47  ;;  %v2809_v19 = vsub.f32 %v210_v35, %v876_v36  ;;  %v882_v39 = vand.u32 4294901760, %v212_v12 }
  0x38   : > { %v2814_v7 = vsub.f32 %v211_v11, %v879_v44  ;;  %v2299_v11 = vpack.c.bf16 %v2686_v56, %v2682_v54  ;;  %v2305_v54 = vpack.c.bf16 %v2700_v63, %v2698_v62 }
  0x39   : > { %2267 = vmatpush3.bf16.msra.mxu0 %v2266_v59  ;;  %v409_v59 = vand.u32 4294901760, %v408_v17  ;;  %v215_v17 = vld [vmem:[%s2777_s22 + $0x48] sm:$0xff] }
  0x3a   : > { %2268 = vmatprep.subr.bf16.mxu0 %v2569_v0 }
  0x3b   : > { %v2281_v5 = vpack.c.bf16 %v409_v59, %v402_v55 }
  0x3d   : > { %2270 = vmatpush3.bf16.msra.mxu0 %v2269_v8  ;;  %v867_v8 = vand.u32 4294901760, %v207_v24 }
  0x3e   : > { %2271 = vmatprep.subr.bf16.mxu0 %v2569_v0 }
  0x3f   : > { %v2793_v47 = vpack.c.bf16 %v867_v8, %v864_v6  ;;  %v2797_v50 = vsub.f32 %v207_v24, %v867_v8 }
  0x41   : > { %2273 = vmatpush3.bf16.msra.mxu0 %v2272_v37  ;;  %v873_v37 = vand.u32 4294901760, %v209_v9  ;;  %2384 = vmatpush3.bf16.msra.mxu1 %v2793_v47  ;;  %v964_v62 = vand.u32 4294901760, %v2797_v50 }
  0x42   : > { %2274 = vmatprep.subr.bf16.mxu0 %v2569_v0  ;;  %2385 = vmatprep.subr.bf16.mxu1 %v2569_v0 }
  0x43   : > { %v2805_v55 = vpack.c.bf16 %v873_v37, %v870_v10  ;;  %v2807_v59 = vsub.f32 %v209_v9, %v873_v37  ;;  %v2831_v10 = vpack.c.bf16 %v879_v44, %v876_v36 }
  0x45   : > { %2276 = vmatpush3.bf16.msra.mxu0 %v2275_v49  ;;  %v2795_v49 = vsub.f32 %v206_v33, %v864_v6  ;;  %v2296_v6 = vpack.c.bf16 %v2680_v53, %v2678_v52  ;;  %2387 = vmatpush3.bf16.msra.mxu1 %v2805_v55  ;;  %v2302_v53 = vpack.c.bf16 %v2694_v60, %v2690_v58 }
  0x46   : > { %2277 = vmatprep.subr.bf16.mxu0 %v2569_v0  ;;  %2388 = vmatprep.subr.bf16.mxu1 %v2569_v0  ;;  %v2308_v58 = vpack.c.bf16 %v2706_v4, %v2704_v3 }
  0x49   : > { %2279 = vmatpush3.bf16.msra.mxu0 %v2278_v51  ;;  %v2293_v51 = vpack.c.bf16 %v2675_v48, %v2672_v45  ;;  %v894_v45 = vand.u32 4294901760, %v216_v18  ;;  %v2817_v48 = vsub.f32 %v212_v12, %v882_v39  ;;  %2390 = vmatpush3.bf16.msra.mxu1 %v2831_v10 }
  0x4a   : > { %2280 = vmatprep.subr.bf16.mxu0 %v2569_v0  ;;  %2391 = vmatprep.subr.bf16.mxu1 %v2569_v0 }
  0x4b   : > { %v2827_v9 = vsub.f32 %v216_v18, %v894_v45 }
  0x4d   : > { %2282 = vmatpush3.bf16.msra.mxu0 %v2281_v5  ;;  %v217_v5 = vld [vmem:[%s2777_s22 + $0x58] sm:$0xff] }
  0x4e   : > { %2283 = vmatprep.subr.bf16.mxu0 %v2569_v0  ;;  %v897_v30 = vand.u32 4294901760, %v217_v5 }
  0x50   : > { %v2833_v35 = vsub.f32 %v217_v5, %v897_v30  ;;  %v2854_v56 = vpack.c.bf16 %v897_v30, %v894_v45 }
  0x51   : > { %2285 = vmatpush3.bf16.msra.mxu0 %v2284_v22  ;;  %v885_v22 = vand.u32 4294901760, %v213_v43 }
  0x52   : > { %2286 = vmatprep.subr.bf16.mxu0 %v2569_v0 }
  0x53   : > { %v2819_v33 = vsub.f32 %v213_v43, %v885_v22  ;;  %v2840_v52 = vpack.c.bf16 %v885_v22, %v882_v39  ;;  %v985_v43 = vand.u32 4294901760, %v2809_v19  ;;  %v999_v22 = vand.u32 4294901760, %v2817_v48 }
  0x54   : > { %1886 = vmatmul.mubr.f32.vlgmr.msra.gmra.mrb[0].mxu0 %v2627_v14 }
  0x55   : > { %2288 = vmatpush3.bf16.msra.mxu0 %v2287_v23  ;;  %1920 = vmatprep.mubr.msk.f32.mxu0 %vm2570_vm0, %v2571_v1  ;;  %v888_v23 = vand.u32 4294901760, %v214_v46  ;;  %v986_v18 = vsub.f32 %v2809_v19, %v985_v43  ;;  %v1000_v45 = vsub.f32 %v2817_v48, %v999_v22 }
  0x56   : > { %2289 = vmatprep.subr.bf16.mxu0 %v2569_v0  ;;  %2393 = vmatpush3.bf16.msra.mxu1 %v2840_v52 }
  0x57   : > { %v2821_v24 = vsub.f32 %v214_v46, %v888_v23  ;;  %2394 = vmatprep.subr.bf16.mxu1 %v2569_v0  ;;  %v992_v46 = vand.u32 4294901760, %v2814_v7  ;;  %v987_v5 = vand.u32 4294901760, %v986_v18 }
  0x59   : > { %2291 = vmatpush3.bf16.msra.mxu0 %v2290_v27  ;;  %v891_v27 = vand.u32 4294901760, %v215_v17 }
  0x5a   : > { %2292 = vmatprep.subr.bf16.mxu0 %v2569_v0 }
  0x5b   : > { %v2825_v8 = vsub.f32 %v215_v17, %v891_v27  ;;  %v2847_v37 = vpack.c.bf16 %v891_v27, %v888_v23  ;;  %v1006_v23 = vand.u32 4294901760, %v2819_v33 }
  0x5d   : > { %2294 = vmatpush3.bf16.msra.mxu0 %v2293_v51  ;;  %2396 = vmatpush3.bf16.msra.mxu1 %v2847_v37  ;;  %v993_v51 = vsub.f32 %v2814_v7, %v992_v46  ;;  %v1007_v30 = vsub.f32 %v2819_v33, %v1006_v23 }
  0x5e   : > { %2295 = vmatprep.subr.bf16.mxu0 %v2569_v0  ;;  %2397 = vmatprep.subr.bf16.mxu1 %v2569_v0 }
  0x5f   : > { %v994_v39 = vand.u32 4294901760, %v993_v51 }
  0x61   : > { %2297 = vmatpush3.bf16.msra.mxu0 %v2296_v6  ;;  %2399 = vmatpush3.bf16.msra.mxu1 %v2854_v56  ;;  %v2413_v27 = vpack.c.bf16 %v994_v39, %v987_v5  ;;  %v1001_v6 = vand.u32 4294901760, %v1000_v45 }
  0x62   : > { %2298 = vmatprep.subr.bf16.mxu0 %v2569_v0  ;;  %2400 = vmatprep.subr.bf16.mxu1 %v2569_v0 }
  0x65   : > { %2300 = vmatpush3.bf16.msra.mxu0 %v2299_v11  ;;  %v1008_v11 = vand.u32 4294901760, %v1007_v30 }
  0x66   : > { %2301 = vmatprep.subr.bf16.mxu0 %v2569_v0 }
  0x69   : > { %2303 = vmatpush3.bf16.msra.mxu0 %v2302_v53  ;;  %v1013_v53 = vand.u32 4294901760, %v2821_v24 }
  0x6a   : > { %2304 = vmatprep.subr.bf16.mxu0 %v2569_v0 }
  0x6d   : > { %2306 = vmatpush3.bf16.msra.mxu0 %v2305_v54  ;;  %v1020_v54 = vand.u32 4294901760, %v2825_v8 }
  0x6e   : > { %2307 = vmatprep.subr.bf16.mxu0 %v2569_v0 }
  0x71   : > { %2309 = vmatpush3.bf16.msra.mxu0 %v2308_v58  ;;  %v2416_v58 = vpack.c.bf16 %v1008_v11, %v1001_v6 }
  0x72   : > { %2310 = vmatprep.subr.bf16.mxu0 %v2569_v0 }
  0x74   : > { %1921 = vmatmul.mubr.f32.vlgmr.msra.gmra.mrb[0].mxu0 %v2636_v20 }
  0x75   : > { %2312 = vmatpush3.bf16.msra.mxu0 %v2625_v13  ;;  %1955 = vmatprep.mubr.msk.f32.mxu0 %vm2570_vm0, %v2571_v1 }
  0x76   : > { %2313 = vmatprep.subr.bf16.mxu0 %v2569_v0 }
  0x79   : > { %2315 = vmatpush3.bf16.msra.mxu0 %v2630_v15 }
  0x7a   : > { %2316 = vmatprep.subr.bf16.mxu0 %v2569_v0 }
  0x7d   : > { %2318 = vmatpush3.bf16.msra.mxu0 %v2639_v21 }
  0x7e   : > { %2319 = vmatprep.subr.bf16.mxu0 %v2569_v0 }
  0x81   : > { %2321 = vmatpush3.bf16.msra.mxu0 %v2648_v28 }
  0x82   : > { %2322 = vmatprep.subr.bf16.mxu0 %v2569_v0 }
  0x85   : > { %2324 = vmatpush3.bf16.msra.mxu0 %v2667_v40 }
  0x86   : > { %2325 = vmatprep.subr.bf16.mxu0 %v2569_v0 }
  0x89   : > { %2327 = vmatpush3.bf16.msra.mxu0 %v2688_v57 }
  0x8a   : > { %2328 = vmatprep.subr.bf16.mxu0 %v2569_v0 }
  0x8d   : > { %2330 = vmatpush3.bf16.msra.mxu0 %v2696_v61 }
  0x8e   : > { %2331 = vmatprep.subr.bf16.mxu0 %v2569_v0 }
  0x91   : > { %2333 = vmatpush3.bf16.msra.mxu0 %v2702_v2 }
  0x92   : > { %2334 = vmatprep.subr.bf16.mxu0 %v2569_v0 }
  0x94   : > { %1956 = vmatmul.mubr.f32.vlgmr.msra.gmra.mrb[0].mxu0 %v305_v26 }
  0x95   : > { %2336 = vmatpush3.bf16.msra.mxu0 %v2724_v25  ;;  %1990 = vmatprep.mubr.msk.f32.mxu0 %vm2570_vm0, %v2571_v1 }
  0x96   : > { %2337 = vmatprep.subr.bf16.mxu0 %v2569_v0 }
  0x99   : > { %2339 = vmatpush3.bf16.msra.mxu0 %v2726_v29  ;;  %v965_v29 = vsub.f32 %v2797_v50, %v964_v62 }
  0x9a   : > { %2340 = vmatprep.subr.bf16.mxu0 %v2569_v0 }
  0x9d   : > { %2342 = vmatpush3.bf16.msra.mxu0 %v2729_v31 }
  0x9e   : > { %2343 = vmatprep.subr.bf16.mxu0 %v2569_v0 }
  0xa1   : > { %2345 = vmatpush3.bf16.msra.mxu0 %v2731_v32  ;;  %v966_v32 = vand.u32 4294901760, %v965_v29 }
  0xa2   : > { %2346 = vmatprep.subr.bf16.mxu0 %v2569_v0 }
  0xa5   : > { %2348 = vmatpush3.bf16.msra.mxu0 %v2733_v34  ;;  %v971_v34 = vand.u32 4294901760, %v2799_v16 }
  0xa6   : > { %2349 = vmatprep.subr.bf16.mxu0 %v2569_v0 }
  0xa9   : > { %2351 = vmatpush3.bf16.msra.mxu0 %v2737_v38  ;;  %v978_v38 = vand.u32 4294901760, %v2807_v59 }
  0xaa   : > { %2352 = vmatprep.subr.bf16.mxu0 %v2569_v0 }
  0xab   : > { %v979_v36 = vsub.f32 %v2807_v59, %v978_v38 }
  0xad   : > { %2354 = vmatpush3.bf16.msra.mxu0 %v2739_v41  ;;  %v980_v12 = vand.u32 4294901760, %v979_v36 }
  0xae   : > { %2355 = vmatprep.subr.bf16.mxu0 %v2569_v0 }
  0xb1   : > { %2357 = vmatpush3.bf16.msra.mxu0 %v2742_v42  ;;  %v972_v42 = vsub.f32 %v2799_v16, %v971_v34 }
  0xb2   : > { %2358 = vmatprep.subr.bf16.mxu0 %v2569_v0 }
  0xb3   : > { %v973_v44 = vand.u32 4294901760, %v972_v42 }
  0xb4   : > { %1991 = vmatmul.mubr.f32.vlgmr.msra.gmra.mrb[0].mxu0 %v2627_v14 }
  0xb5   : > { %2360 = vmatpush3.bf16.msra.mxu0 %v2625_v13  ;;  %2025 = vmatprep.mubr.msk.f32.mxu0 %vm2570_vm0, %v2571_v1  ;;  %v218_v13 = vld [vmem:[%s2777_s22 + $0x60] sm:$0xff]  ;;  %v2410_v17 = vpack.c.bf16 %v980_v12, %v973_v44 }
  0xb6   : > { %2361 = vmatprep.subr.bf16.mxu0 %v2569_v0  ;;  %v900_v20 = vand.u32 4294901760, %v218_v13 }
  0xb8   : > { %v2931_v63 = vsub.f32 %v218_v13, %v900_v20  ;;  %v1014_v13 = vsub.f32 %v2821_v24, %v1013_v53 }
  0xb9   : > { %2363 = vmatpush3.bf16.msra.mxu0 %v2630_v15  ;;  %v219_v15 = vld [vmem:[%s2777_s22 + $0x68] sm:$0xff] }
  0xba   : > { %2364 = vmatprep.subr.bf16.mxu0 %v2569_v0 }
  0xbd   : > { %2366 = vmatpush3.bf16.msra.mxu0 %v2639_v21  ;;  %v903_v21 = vand.u32 4294901760, %v219_v15 }
  0xbe   : > { %2367 = vmatprep.subr.bf16.mxu0 %v2569_v0 }
  0xbf   : > { %v2923_v26 = vpack.c.bf16 %v903_v21, %v900_v20  ;;  %v1015_v20 = vand.u32 4294901760, %v1014_v13 }
  0xc1   : > { %2369 = vmatpush3.bf16.msra.mxu0 %v2648_v28  ;;  %v220_v28 = vld [vmem:[%s2777_s22 + $0x70] sm:$0xff]  ;;  %2402 = vmatpush3.bf16.msra.mxu1 %v2923_v26 }
  0xc2   : > { %2370 = vmatprep.subr.bf16.mxu0 %v2569_v0  ;;  %2403 = vmatprep.subr.bf16.mxu1 %v2569_v0 }
  0xc5   : > { %2372 = vmatpush3.bf16.msra.mxu0 %v2667_v40  ;;  %v221_v40 = vld [vmem:[%s2777_s22 + $0x78] sm:$0xff] }
  0xc6   : > { %2373 = vmatprep.subr.bf16.mxu0 %v2569_v0  ;;  %v909_v60 = vand.u32 4294901760, %v221_v40 }
  0xc8   : > { %v2939_v4 = vsub.f32 %v221_v40, %v909_v60  ;;  %v1034_v40 = vand.u32 4294901760, %v2833_v35 }
  0xc9   : > { %2375 = vmatpush3.bf16.msra.mxu0 %v2688_v57  ;;  %v906_v57 = vand.u32 4294901760, %v220_v28 }
  0xca   : > { %2376 = vmatprep.subr.bf16.mxu0 %v2569_v0  ;;  %v3138_v39 = vand.u32 4294901760, %v2939_v4 }
  0xcb   : > { %v2937_v3 = vsub.f32 %v220_v28, %v906_v57  ;;  %v1027_v28 = vand.u32 4294901760, %v2827_v9 }
  0xcc   : > { %v1063_v6 = vsub.f32 %v2939_v4, %v3138_v39 }
  0xcd   : > { %2378 = vmatpush3.bf16.msra.mxu0 %v2696_v61  ;;  %v957_v61 = vand.u32 4294901760, %v2795_v49  ;;  %v1055_v5 = vand.u32 4294901760, %v2937_v3 }
  0xce   : > { %2379 = vmatprep.subr.bf16.mxu0 %v2569_v0  ;;  %v1064_v13 = vand.u32 4294901760, %v1063_v6 }
  0xcf   : > { %v958_v25 = vsub.f32 %v2795_v49, %v957_v61  ;;  %v1056_v30 = vsub.f32 %v2937_v3, %v1055_v5 }
  0xd1   : > { %2381 = vmatpush3.bf16.msra.mxu0 %v2702_v2  ;;  %v2935_v2 = vpack.c.bf16 %v909_v60, %v906_v57  ;;  %v959_v31 = vand.u32 4294901760, %v958_v25  ;;  %v1028_v60 = vsub.f32 %v2827_v9, %v1027_v28  ;;  %v1035_v25 = vsub.f32 %v2833_v35, %v1034_v40 }
  0xd2   : > { %v1057_v11 = vand.u32 4294901760, %v1056_v30 }
  0xd3   : > { %2405 = vmatpush3.bf16.msra.mxu1 %v2935_v2  ;;  %v2951_v41 = vpack.c.bf16 %v966_v32, %v959_v31  ;;  %v1029_v29 = vand.u32 4294901760, %v1028_v60  ;;  %v1036_v31 = vand.u32 4294901760, %v1035_v25  ;;  %v1041_v32 = vand.u32 4294901760, %v2931_v63 }
  0xd4   : > { %2026 = vmatmul.mubr.f32.vlgmr.msra.gmra.mrb[0].mxu0 %v2627_v14  ;;  %v2933_v14 = vsub.f32 %v219_v15, %v903_v21  ;;  %2406 = vmatprep.subr.bf16.mxu1 %v2569_v0  ;;  %v1021_v15 = vsub.f32 %v2825_v8, %v1020_v54  ;;  %v2437_v60 = vpack.c.bf16 %v2814_v7, %v2809_v19  ;;  %v3139_v7 = vand.u32 4294901760, %v2939_v4 }
  0xd5   : > { %v2422_v36 = vpack.c.bf16 %v1036_v31, %v1029_v29  ;;  %v1042_v44 = vsub.f32 %v2931_v63, %v1041_v32  ;;  %v2440_v25 = vpack.c.bf16 %v2819_v33, %v2817_v48  ;;  %v2443_v29 = vpack.c.bf16 %v2825_v8, %v2821_v24 }
  0xd6   : > { %v1022_v21 = vand.u32 4294901760, %v1021_v15  ;;  %v1048_v42 = vand.u32 4294901760, %v2933_v14  ;;  %v2428_v15 = vpack.c.bf16 %v1064_v13, %v1057_v11  ;;  %v2446_v31 = vpack.c.bf16 %v2833_v35, %v2827_v9 }
  0xd7   : > { %v1043_v18 = vand.u32 4294901760, %v1042_v44  ;;  %v2449_v44 = vpack.c.bf16 %v2933_v14, %v2931_v63  ;;  %v2500_v48 = vpack.c.bf16 %v3139_v7, %v1055_v5  ;;  %v1514_v24 = vlaneseq }
  0xd8   : > { %v2419_v57 = vpack.c.bf16 %v1022_v21, %v1015_v20  ;;  %v1049_v12 = vsub.f32 %v2933_v14, %v1048_v42  ;;  %v2431_v20 = vpack.c.bf16 %v2797_v50, %v2795_v49  ;;  %v2434_v21 = vpack.c.bf16 %v2807_v59, %v2799_v16 }
  0xd9   : > { %v2485_v49 = vpack.c.bf16 %v992_v46, %v985_v43  ;;  %v2488_v50 = vpack.c.bf16 %v1006_v23, %v999_v22  ;;  %v2491_v16 = vpack.c.bf16 %v1020_v54, %v1013_v53  ;;  %v2494_v59 = vpack.c.bf16 %v1034_v40, %v1027_v28 }
  0xda   : > { %v1050_v51 = vand.u32 4294901760, %v1049_v12  ;;  %v2452_v12 = vpack.c.bf16 %v2939_v4, %v2937_v3  ;;  %v2497_v19 = vpack.c.bf16 %v1048_v42, %v1041_v32  ;;  %v1515_v8 = vand.u32 127, %v1514_v24 }
  0xdc   : > { %v2425_v45 = vpack.c.bf16 %v1050_v51, %v1043_v18 }
 0x1a7   : > { %v859_v18 = vpop.f32.mrb[0].mxu0 }
 0x1a8   : > { %v3023_v51 = vand.u32 4294901760, %v859_v18  ;;  %v2027_v30 = vpop.f32.mrb[1].mxu0 }
 0x1aa   : > { %v945_v6 = vsub.f32 %v859_v18, %v3023_v51 }
 0x1ac   : > { %v946_v11 = vand.u32 4294901760, %v945_v6 }
 0x1ae   : > { %v947_v13 = vsub.f32 %v945_v6, %v946_v11 }
 0x1b0   : > { %v948_v39 = vand.u32 4294901760, %v947_v13 }
 0x1b2   : > { %2061 = vmatmul.mubr.f32.vlgmr.msra.gmra.mrb[0].mxu1 %v948_v39 }
 0x1b3   : > { %2408 = vmatpush3.bf16.msra.mxu1 %v2951_v41  ;;  %2095 = vmatprep.mubr.msk.f32.mxu1 %vm2570_vm0, %v2571_v1  ;;  %v2479_v41 = vpack.c.bf16 %v964_v62, %v957_v61 }
 0x1b4   : > { %2409 = vmatprep.subr.bf16.mxu1 %v2569_v0 }
 0x1b7   : > { %2411 = vmatpush3.bf16.msra.mxu1 %v2410_v17  ;;  %v2482_v17 = vpack.c.bf16 %v978_v38, %v971_v34 }
 0x1b8   : > { %2412 = vmatprep.subr.bf16.mxu1 %v2569_v0 }
 0x1bb   : > { %2414 = vmatpush3.bf16.msra.mxu1 %v2413_v27 }
 0x1bc   : > { %2415 = vmatprep.subr.bf16.mxu1 %v2569_v0 }
 0x1bf   : > { %2417 = vmatpush3.bf16.msra.mxu1 %v2416_v58 }
 0x1c0   : > { %2418 = vmatprep.subr.bf16.mxu1 %v2569_v0 }
 0x1c3   : > { %2420 = vmatpush3.bf16.msra.mxu1 %v2419_v57 }
 0x1c4   : > { %2421 = vmatprep.subr.bf16.mxu1 %v2569_v0 }
 0x1c7   : > { %2423 = vmatpush3.bf16.msra.mxu1 %v2422_v36 }
 0x1c8   : > { %2424 = vmatprep.subr.bf16.mxu1 %v2569_v0 }
 0x1cb   : > { %2426 = vmatpush3.bf16.msra.mxu1 %v2425_v45 }
 0x1cc   : > { %2427 = vmatprep.subr.bf16.mxu1 %v2569_v0 }
 0x1cf   : > { %2429 = vmatpush3.bf16.msra.mxu1 %v2428_v15 }
 0x1d0   : > { %2430 = vmatprep.subr.bf16.mxu1 %v2569_v0 }
 0x1d2   : > { %2096 = vmatmul.mubr.f32.vlgmr.msra.gmra.mrb[0].mxu1 %v3023_v51 }
 0x1d3   : > { %2432 = vmatpush3.bf16.msra.mxu1 %v2431_v20  ;;  %2130 = vmatprep.mubr.msk.f32.mxu1 %vm2570_vm0, %v2571_v1 }
 0x1d4   : > { %2433 = vmatprep.subr.bf16.mxu1 %v2569_v0 }
 0x1d7   : > { %2435 = vmatpush3.bf16.msra.mxu1 %v2434_v21 }
 0x1d8   : > { %2436 = vmatprep.subr.bf16.mxu1 %v2569_v0 }
 0x1db   : > { %2438 = vmatpush3.bf16.msra.mxu1 %v2437_v60 }
 0x1dc   : > { %2439 = vmatprep.subr.bf16.mxu1 %v2569_v0 }
 0x1df   : > { %2441 = vmatpush3.bf16.msra.mxu1 %v2440_v25 }
 0x1e0   : > { %2442 = vmatprep.subr.bf16.mxu1 %v2569_v0 }
 0x1e3   : > { %2444 = vmatpush3.bf16.msra.mxu1 %v2443_v29 }
 0x1e4   : > { %2445 = vmatprep.subr.bf16.mxu1 %v2569_v0 }
 0x1e7   : > { %2447 = vmatpush3.bf16.msra.mxu1 %v2446_v31 }
 0x1e8   : > { %2448 = vmatprep.subr.bf16.mxu1 %v2569_v0 }
 0x1eb   : > { %2450 = vmatpush3.bf16.msra.mxu1 %v2449_v44 }
 0x1ec   : > { %2451 = vmatprep.subr.bf16.mxu1 %v2569_v0 }
 0x1ef   : > { %2453 = vmatpush3.bf16.msra.mxu1 %v2452_v12 }
 0x1f0   : > { %2454 = vmatprep.subr.bf16.mxu1 %v2569_v0 }
 0x1f2   : > { %2131 = vmatmul.mubr.f32.vlgmr.msra.gmra.mrb[0].mxu1 %v945_v6 }
 0x1f3   : > { %2456 = vmatpush3.bf16.msra.mxu1 %v2793_v47  ;;  %2165 = vmatprep.mubr.msk.f32.mxu1 %vm2570_vm0, %v2571_v1 }
 0x1f4   : > { %2457 = vmatprep.subr.bf16.mxu1 %v2569_v0 }
 0x1f7   : > { %2459 = vmatpush3.bf16.msra.mxu1 %v2805_v55 }
 0x1f8   : > { %2460 = vmatprep.subr.bf16.mxu1 %v2569_v0 }
 0x1fb   : > { %2462 = vmatpush3.bf16.msra.mxu1 %v2831_v10 }
 0x1fc   : > { %2463 = vmatprep.subr.bf16.mxu1 %v2569_v0 }
 0x1ff   : > { %2465 = vmatpush3.bf16.msra.mxu1 %v2840_v52 }
 0x200   : > { %2466 = vmatprep.subr.bf16.mxu1 %v2569_v0 }
 0x203   : > { %2468 = vmatpush3.bf16.msra.mxu1 %v2847_v37 }
 0x204   : > { %2469 = vmatprep.subr.bf16.mxu1 %v2569_v0 }
 0x207   : > { %2471 = vmatpush3.bf16.msra.mxu1 %v2854_v56 }
 0x208   : > { %2472 = vmatprep.subr.bf16.mxu1 %v2569_v0 }
 0x20b   : > { %2474 = vmatpush3.bf16.msra.mxu1 %v2923_v26 }
 0x20c   : > { %2475 = vmatprep.subr.bf16.mxu1 %v2569_v0 }
 0x20f   : > { %2477 = vmatpush3.bf16.msra.mxu1 %v2935_v2 }
 0x210   : > { %2478 = vmatprep.subr.bf16.mxu1 %v2569_v0 }
 0x212   : > { %2166 = vmatmul.mubr.f32.vlgmr.msra.gmra.mrb[0].mxu1 %v946_v11 }
 0x213   : > { %2480 = vmatpush3.bf16.msra.mxu1 %v2479_v41  ;;  %2200 = vmatprep.mubr.msk.f32.mxu1 %vm2570_vm0, %v2571_v1 }
 0x214   : > { %2481 = vmatprep.subr.bf16.mxu1 %v2569_v0 }
 0x217   : > { %2483 = vmatpush3.bf16.msra.mxu1 %v2482_v17 }
 0x218   : > { %2484 = vmatprep.subr.bf16.mxu1 %v2569_v0 }
 0x21b   : > { %2486 = vmatpush3.bf16.msra.mxu1 %v2485_v49 }
 0x21c   : > { %2487 = vmatprep.subr.bf16.mxu1 %v2569_v0 }
 0x21f   : > { %2489 = vmatpush3.bf16.msra.mxu1 %v2488_v50 }
 0x220   : > { %2490 = vmatprep.subr.bf16.mxu1 %v2569_v0 }
 0x223   : > { %2492 = vmatpush3.bf16.msra.mxu1 %v2491_v16 }
 0x224   : > { %2493 = vmatprep.subr.bf16.mxu1 %v2569_v0 }
 0x227   : > { %2495 = vmatpush3.bf16.msra.mxu1 %v2494_v59 }
 0x228   : > { %2496 = vmatprep.subr.bf16.mxu1 %v2569_v0 }
 0x22b   : > { %2498 = vmatpush3.bf16.msra.mxu1 %v2497_v19 }
 0x22c   : > { %2499 = vmatprep.subr.bf16.mxu1 %v2569_v0 }
 0x22f   : > { %2501 = vmatpush3.bf16.msra.mxu1 %v2500_v48 }
 0x230   : > { %2502 = vmatprep.subr.bf16.mxu1 %v2569_v0 }
 0x232   : > { %2201 = vmatmul.mubr.f32.vlgmr.msra.gmra.mrb[0].mxu1 %v3023_v51 }
 0x233   : > { %2504 = vmatpush3.bf16.msra.mxu1 %v2793_v47  ;;  %2235 = vmatprep.mubr.msk.f32.mxu1 %vm2570_vm0, %v2571_v1 }
 0x234   : > { %2505 = vmatprep.subr.bf16.mxu1 %v2569_v0 }
 0x237   : > { %2507 = vmatpush3.bf16.msra.mxu1 %v2805_v55 }
 0x238   : > { %2508 = vmatprep.subr.bf16.mxu1 %v2569_v0 }
 0x23b   : > { %2510 = vmatpush3.bf16.msra.mxu1 %v2831_v10 }
 0x23c   : > { %2511 = vmatprep.subr.bf16.mxu1 %v2569_v0 }
 0x23f   : > { %2513 = vmatpush3.bf16.msra.mxu1 %v2840_v52 }
 0x240   : > { %2514 = vmatprep.subr.bf16.mxu1 %v2569_v0 }
 0x243   : > { %2516 = vmatpush3.bf16.msra.mxu1 %v2847_v37 }
 0x244   : > { %2517 = vmatprep.subr.bf16.mxu1 %v2569_v0 }
 0x247   : > { %2519 = vmatpush3.bf16.msra.mxu1 %v2854_v56 }
 0x248   : > { %2520 = vmatprep.subr.bf16.mxu1 %v2569_v0 }
 0x24b   : > { %2522 = vmatpush3.bf16.msra.mxu1 %v2923_v26 }
 0x24c   : > { %2523 = vmatprep.subr.bf16.mxu1 %v2569_v0 }
 0x24f   : > { %2525 = vmatpush3.bf16.msra.mxu1 %v2935_v2 }
 0x252   : > { %2236 = vmatmul.mubr.f32.vlgmr.msra.gmra.mrb[0].mxu1 %v3023_v51 }
 0x325   : > { %v1500_v1 = vpop.f32.mrb[0].mxu1 }
 0x326   : > { %v1504_v47 = vmax.f32 %v1500_v1, 0.0  ;;  %v2237_v55 = vpop.f32.mrb[1].mxu1 }
 0x328   : > { %v1505_v33 = vmul.f32 1.3333334, %v1504_v47 }
 0x32a   : > { %1506 = vmax.xlane.f32.xlu0 %v1505_v33 }
 0x3b7   : > { %v1507_v9 = vpop.xlane.xlu0 %1506 }
 0x3b8   : > { %v1508_v10 = vsub.f32 %v1505_v33, %v1507_v9  ;;  %vm1516_vm1 = vcmp.ge.f32.partialorder %v1505_v33, %v1507_v9 }
 0x3b9   : > { %v1517_v35 = vsel %vm1516_vm1, %v1515_v8, 128 }
 0x3ba   : > { %v1509_v52 = vmul.f32 1.442695, %v1508_v10  ;;  %v1519_v37 = vshra.s32 %v1517_v35, 16  ;;  %v1518_v26 = vand.u32 65535, %v1517_v35 }
 0x3bc   : > { %v1521_v56 = vcvt.s32.f32 %v1519_v37  ;;  %2557 = vpow2.f32 %v1509_v52  ;;  %v1520_v62 = vcvt.s32.f32 %v1518_v26 }
 0x3be   : > { %1522 = vmin.xlane.f32.xlu0 %v1521_v56 }
 0x3c6   : > { %v2558_v0 = vpop.eup %2557 }
 0x3c7   : > { %1511 = vadd.xlane.f32.xlu1 %v2558_v0 }
 0x44b   : > { %v1523_v61 = vpop.xlane.xlu0 %1522 }
 0x44c   : > { %vm1524_vm2 = vcmp.eq.f32.partialorder %v1521_v56, %v1523_v61  ;;  %v1529_v2 = vcvt.f32.s32 %v1523_v61 }
 0x44d   : > { %v1525_v63 = vsel %vm1524_vm2, %v1520_v62, inf }
 0x44e   : > { %1526 = vmin.xlane.f32.xlu1 %v1525_v63  ;;  %v1530_v4 = vshll.u32 %v1529_v2, 16 }
 0x454   : > { %v1512_v14 = vpop.xlane.xlu1 %1511 }
 0x455   : > { %2559 = vrcp.f32 %v1512_v14 }
 0x45f   : > { %v2560_v43 = vpop.eup %2559 }
 0x4db   : > { %v1527_v3 = vpop.xlane.xlu1 %1526 }
 0x4dc   : > { %v1528_v34 = vcvt.f32.s32 %v1527_v3 }
 0x4de   : > { %v1531_v38 = vadd.s32 %v1530_v4, %v1528_v34 }
 0x4e0   : > { %vm1532_vm3 = vcmp.eq.s32.totalorder %v1515_v8, %v1531_v38 }
 0x4e1   : > { %v1533_v46 = vsel %vm1532_vm3, %v2560_v43, 0.0 }
 0x4e2   : > { %1534 = vst [vmem:[%s188_s26] sm:$0xff] %v1533_v46 }
 0x4e3 PF: > { %s13_s12 = sadd.s32 1, %s2567_s12  }
 0x4e4   : > { %p10_p4 = scmp.ge.s32.totalorder %s13_s12, 6  }
 0x4e6   :  { %12 = sbr.rel (!%p10_p4) target bundleno = 1 (0x1), region = 65 }

</bundles_post_ra>
